<compile_context>
chip_gen: v6e
topology: v6e:2x2x1
jax: 0.10.0
libtpu: 0.0.40
codegen_flags: <defaults>
</compile_context>

<pallas_src>
import functools

import jax
import jax.numpy as jnp
from jax.experimental import pallas as pl
from jax.experimental.pallas import tpu as pltpu


def _gru_fc_kernel(x_ref,        # (T*Bp, H)   embedded tokens, flattened over (t, batch)
                   wih_ref,      # (H, Gp)     W_ih^T fused over gates [r, z, n], lane-padded
                   bih_ref,      # (1, Gp)     b_ih with b_hr/b_hz pre-added, lane-padded
                   whh_ref,      # (H, Gp)     W_hh^T fused over gates [r, z, n], lane-padded
                   bhn_ref,      # (1, H)      b_hn (must stay inside the r* term)
                   wfc_ref,      # (H, Op)     fc weight^T, lane-padded
                   bfc_ref,      # (1, Op)
                   out_ref,      # (Bp, Op)
                   gi_ref,       # VMEM scratch (T*Bp, Gp): hoisted input projections
                   *, seq_len, batch_p, hidden):
    H = hidden
    Bp = batch_p

    # Hoisted input projection: one big, well-shaped MXU matmul for all timesteps.
    # Gp is a multiple of 128 -> lane-dense (unmasked) stores into the scratch slab.
    gi_ref[...] = (jnp.dot(x_ref[...], wih_ref[...],
                           preferred_element_type=jnp.float32) + bih_ref[...])

    whh = whh_ref[...]                                    # loop-invariant, vreg-resident
    bhn = jnp.broadcast_to(bhn_ref[...], (Bp, H))         # broadcast hoisted out of loop

    def step(t, h):
        row = pl.multiple_of(t * Bp, Bp)                  # sublane-aligned dynamic slice
        gi = gi_ref[pl.ds(row, Bp), :]                    # (Bp, Gp) precomputed i_r|i_z|i_n
        gh = jnp.dot(h, whh, preferred_element_type=jnp.float32)   # single fused matmul
        rz = jax.nn.sigmoid(gi[:, :2 * H] + gh[:, :2 * H])          # one sigmoid for r and z
        r = rz[:, :H]
        z = rz[:, H:2 * H]
        n = jnp.tanh(gi[:, 2 * H:3 * H] + r * (gh[:, 2 * H:3 * H] + bhn))
        return n + z * (h - n)                            # == (1-z)*n + z*h

    h0 = jnp.zeros((Bp, H), jnp.float32)                  # torch: hidden init = zeros
    h_last = jax.lax.fori_loop(0, seq_len, step, h0, unroll=True)

    # fc on the final hidden state; lane-dense (Bp, Op) store.
    out_ref[...] = (jnp.dot(h_last, wfc_ref[...],
                            preferred_element_type=jnp.float32)
                    + bfc_ref[...]).astype(out_ref.dtype)


def rnn_classifier_forward(tokens, seq_lengths, params):
    """Forward pass equivalent to RNNClassifier.forward (seq_lengths unused, as in torch code)."""
    del seq_lengths  # unused in the reference forward (only len(input[1]) == batch is used)
    T, B = tokens.shape
    H = params["embedding"].shape[1]
    O = params["fc_w"].shape[0]

    Bp = ((B + 7) // 8) * 8              # sublane-aligned batch
    Op = ((O + 127) // 128) * 128        # lane-dense fc output slab
    Gp = ((3 * H + 127) // 128) * 128    # lane-dense fused gate dimension

    # Glue: embedding gather (no clean tiled Pallas form for a tiny vocab gather) + padding.
    # TODO(synk): embedding lookup stays as jnp.take outside the kernel.
    x = jnp.take(params["embedding"], tokens, axis=0)                  # (T, B, H)
    x = jnp.pad(x, ((0, 0), (0, Bp - B), (0, 0)))                      # (T, Bp, H)
    x_flat = x.reshape(T * Bp, H).astype(jnp.float32)

    # Fused gate operands (torch gate order [r, z, n]).
    wih_t = params["gru_w_ih"].T.astype(jnp.float32)                   # (H, 3H)
    whh_t = params["gru_w_hh"].T.astype(jnp.float32)                   # (H, 3H)
    b_ih = params["gru_b_ih"].astype(jnp.float32)                      # (3H,)
    b_hh = params["gru_b_hh"].astype(jnp.float32)                      # (3H,)
    # Pre-add b_hr + b_ir and b_hz + b_iz; keep b_hn separate (inside r * (.)).
    bi_fused = jnp.concatenate([b_ih[:2 * H] + b_hh[:2 * H], b_ih[2 * H:]])  # (3H,)

    # Lane-pad the gate dimension with zeros; padded lanes are never read back.
    wih_p = jnp.pad(wih_t, ((0, 0), (0, Gp - 3 * H)))                  # (H, Gp)
    whh_p = jnp.pad(whh_t, ((0, 0), (0, Gp - 3 * H)))                  # (H, Gp)
    bih_p = jnp.pad(bi_fused, (0, Gp - 3 * H))[None, :]                # (1, Gp)
    bhn = b_hh[2 * H:][None, :]                                        # (1, H)

    wfc_p = jnp.pad(params["fc_w"].T, ((0, 0), (0, Op - O))).astype(jnp.float32)   # (H, Op)
    bfc_p = jnp.pad(params["fc_b"], (0, Op - O))[None, :].astype(jnp.float32)      # (1, Op)

    vmem = pl.BlockSpec(memory_space=pltpu.MemorySpace.VMEM)   # untiled, DMA'd exactly once

    kernel = functools.partial(_gru_fc_kernel, seq_len=T, batch_p=Bp, hidden=H)

    out_p = pl.pallas_call(
        kernel,
        out_shape=jax.ShapeDtypeStruct((Bp, Op), jnp.float32),
        in_specs=[vmem] * 7,
        out_specs=vmem,
        scratch_shapes=[pltpu.VMEM((T * Bp, Gp), jnp.float32)],        # hoisted gate slab
    )(x_flat, wih_p, bih_p, whh_p, bhn, wfc_p, bfc_p)

    return out_p[:B, :O]


def _reference_forward(tokens, params):
    """Pure-JAX reference matching torch semantics (for verification)."""
    T, B = tokens.shape
    H = params["embedding"].shape[1]
    x = jnp.take(params["embedding"], tokens, axis=0)
    w_ih, w_hh = params["gru_w_ih"], params["gru_w_hh"]
    b_ih, b_hh = params["gru_b_ih"], params["gru_b_hh"]

    def step(h, xt):
        gi = xt @ w_ih.T + b_ih
        gh = h @ w_hh.T + b_hh
        i_r, i_z, i_n = gi[:, :H], gi[:, H:2 * H], gi[:, 2 * H:]
        h_r, h_z, h_n = gh[:, :H], gh[:, H:2 * H], gh[:, 2 * H:]
        r = jax.nn.sigmoid(i_r + h_r)
        z = jax.nn.sigmoid(i_z + h_z)
        n = jnp.tanh(i_n + r * h_n)
        h_new = (1.0 - z) * n + z * h
        return h_new, None

    h0 = jnp.zeros((B, H), jnp.float32)
    h_last, _ = jax.lax.scan(step, h0, x)
    return h_last @ params["fc_w"].T + params["fc_b"]


if __name__ == "__main__":
    # Model hyperparameters (small, consistent with the module's __init__).
    INPUT_SIZE = 20     # vocab size for the Embedding
    HIDDEN = 32
    OUTPUT = 8
    SEQ = 8
    BATCH = 4

    key = jax.random.PRNGKey(0)
    ks = jax.random.split(key, 8)
    params = {
        "embedding": jax.random.normal(ks[0], (INPUT_SIZE, HIDDEN), jnp.float32) * 0.5,
        "gru_w_ih":  jax.random.normal(ks[1], (3 * HIDDEN, HIDDEN), jnp.float32) * 0.2,
        "gru_w_hh":  jax.random.normal(ks[2], (3 * HIDDEN, HIDDEN), jnp.float32) * 0.2,
        "gru_b_ih":  jax.random.normal(ks[3], (3 * HIDDEN,), jnp.float32) * 0.1,
        "gru_b_hh":  jax.random.normal(ks[4], (3 * HIDDEN,), jnp.float32) * 0.1,
        "fc_w":      jax.random.normal(ks[5], (OUTPUT, HIDDEN), jnp.float32) * 0.2,
        "fc_b":      jax.random.normal(ks[6], (OUTPUT,), jnp.float32) * 0.1,
    }

    tokens = jax.random.randint(ks[7], (SEQ, BATCH), 0, INPUT_SIZE, dtype=jnp.int32)
    # TODO(synk): seq_lengths is unused, matching the reference forward (no pack_padded_sequence masking).
    seq_lengths = jnp.full((BATCH,), SEQ, dtype=jnp.int32)

    out = rnn_classifier_forward(tokens, seq_lengths, params)
    out = jax.block_until_ready(out)

    ref = _reference_forward(tokens, params)
    assert out.shape == (BATCH, OUTPUT)
    assert jnp.allclose(out, ref, atol=1e-4, rtol=1e-4), "mismatch vs pure-JAX reference"

    print("KERNEL_OK")
</pallas_src>

<mosaic_0001>
module attributes {stable_mosaic.version = 11 : i64} {
  func.func @_gru_fc_kernel(%arg0: memref<64x32xf32, #tpu.memory_space<vmem>>, %arg1: memref<32x128xf32, #tpu.memory_space<vmem>>, %arg2: memref<1x128xf32, #tpu.memory_space<vmem>>, %arg3: memref<32x128xf32, #tpu.memory_space<vmem>>, %arg4: memref<1x32xf32, #tpu.memory_space<vmem>>, %arg5: memref<32x128xf32, #tpu.memory_space<vmem>>, %arg6: memref<1x128xf32, #tpu.memory_space<vmem>>, %arg7: memref<8x128xf32, #tpu.memory_space<vmem>>, %arg8: memref<64x128xf32, #tpu.memory_space<vmem>>) attributes {dimension_semantics = [], scalar_prefetch = 0 : i64, scratch_operands = 1 : i64, tpu.core_type = #tpu.core_type<tc>} {
    %c0 = arith.constant 0 : index
    %c0_0 = arith.constant 0 : index
    %0 = vector.load %arg0[%c0, %c0_0] : memref<64x32xf32, #tpu.memory_space<vmem>>, vector<64x32xf32>
    %c0_1 = arith.constant 0 : index
    %c0_2 = arith.constant 0 : index
    %1 = vector.load %arg1[%c0_1, %c0_2] : memref<32x128xf32, #tpu.memory_space<vmem>>, vector<32x128xf32>
    %cst = arith.constant dense<0.000000e+00> : vector<64x128xf32>
    %2 = tpu.matmul %0, %1, %cst {dimension_numbers = #tpu.dot_dimension_numbers<[1], [0], [0], [1], [0, 0, 1, 1], [], []>} : vector<64x32xf32>, vector<32x128xf32>, vector<64x128xf32> -> vector<64x128xf32>
    %c0_3 = arith.constant 0 : index
    %c0_4 = arith.constant 0 : index
    %3 = vector.load %arg2[%c0_3, %c0_4] : memref<1x128xf32, #tpu.memory_space<vmem>>, vector<1x128xf32>
    %4 = vector.broadcast %3 : vector<1x128xf32> to vector<64x128xf32>
    %5 = arith.addf %2, %4 : vector<64x128xf32>
    %c0_5 = arith.constant 0 : index
    %c0_6 = arith.constant 0 : index
    %6 = vector.load %arg8[%c0_5, %c0_6] : memref<64x128xf32, #tpu.memory_space<vmem>>, vector<64x128xf32>
    tpu.vector_store %arg8[%c0_5, %c0_6], %5 {strides = array<i32>} : memref<64x128xf32, #tpu.memory_space<vmem>>, vector<64x128xf32>,
    %c0_7 = arith.constant 0 : index
    %c0_8 = arith.constant 0 : index
    %7 = vector.load %arg3[%c0_7, %c0_8] : memref<32x128xf32, #tpu.memory_space<vmem>>, vector<32x128xf32>
    %c0_9 = arith.constant 0 : index
    %c0_10 = arith.constant 0 : index
    %8 = vector.load %arg4[%c0_9, %c0_10] : memref<1x32xf32, #tpu.memory_space<vmem>>, vector<1x32xf32>
    %9 = vector.shape_cast %8 : vector<1x32xf32> to vector<1x32xf32>
    %10 = vector.broadcast %9 : vector<1x32xf32> to vector<8x32xf32>
    %cst_11 = arith.constant 0.000000e+00 : f32
    %11 = vector.broadcast %cst_11 : f32 to vector<8x32xf32>
    %c0_i32 = arith.constant 0 : i32
    %c8_i32 = arith.constant 8 : i32
    %12 = arith.muli %c0_i32, %c8_i32 : i32
    %13 = tpu.assume_multiple %12, 8 : i32
    %14 = arith.index_cast %13 : i32 to index
    %c0_12 = arith.constant 0 : index
    %15 = vector.load %arg8[%14, %c0_12] : memref<64x128xf32, #tpu.memory_space<vmem>>, vector<8x128xf32>
    %cst_13 = arith.constant dense<0.000000e+00> : vector<8x128xf32>
    %16 = tpu.matmul %11, %7, %cst_13 {dimension_numbers = #tpu.dot_dimension_numbers<[1], [0], [0], [1], [0, 0, 1, 1], [], []>} : vector<8x32xf32>, vector<32x128xf32>, vector<8x128xf32> -> vector<8x128xf32>
    %17 = vector.extract_strided_slice %15 {offsets = [0, 0], sizes = [8, 64], strides = [1, 1]} : vector<8x128xf32> to vector<8x64xf32>
    %18 = vector.extract_strided_slice %16 {offsets = [0, 0], sizes = [8, 64], strides = [1, 1]} : vector<8x128xf32> to vector<8x64xf32>
    %19 = arith.addf %17, %18 : vector<8x64xf32>
    %20 = arith.negf %19 : vector<8x64xf32>
    %21 = math.exp %20 : vector<8x64xf32>
    %cst_14 = arith.constant 1.000000e+00 : f32
    %22 = vector.broadcast %cst_14 : f32 to vector<8x64xf32>
    %23 = arith.addf %22, %21 : vector<8x64xf32>
    %24 = arith.divf %22, %23 : vector<8x64xf32>
    %25 = vector.extract_strided_slice %24 {offsets = [0, 0], sizes = [8, 32], strides = [1, 1]} : vector<8x64xf32> to vector<8x32xf32>
    %26 = vector.extract_strided_slice %24 {offsets = [0, 32], sizes = [8, 32], strides = [1, 1]} : vector<8x64xf32> to vector<8x32xf32>
    %27 = vector.extract_strided_slice %15 {offsets = [0, 64], sizes = [8, 32], strides = [1, 1]} : vector<8x128xf32> to vector<8x32xf32>
    %28 = vector.extract_strided_slice %16 {offsets = [0, 64], sizes = [8, 32], strides = [1, 1]} : vector<8x128xf32> to vector<8x32xf32>
    %29 = arith.addf %28, %10 : vector<8x32xf32>
    %30 = arith.mulf %25, %29 : vector<8x32xf32>
    %31 = arith.addf %27, %30 : vector<8x32xf32>
    %32 = math.tanh %31 : vector<8x32xf32>
    %33 = arith.subf %11, %32 : vector<8x32xf32>
    %34 = arith.mulf %26, %33 : vector<8x32xf32>
    %35 = arith.addf %32, %34 : vector<8x32xf32>
    %c1_i32 = arith.constant 1 : i32
    %c8_i32_15 = arith.constant 8 : i32
    %36 = arith.muli %c1_i32, %c8_i32_15 : i32
    %37 = tpu.assume_multiple %36, 8 : i32
    %38 = arith.index_cast %37 : i32 to index
    %c0_16 = arith.constant 0 : index
    %39 = vector.load %arg8[%38, %c0_16] : memref<64x128xf32, #tpu.memory_space<vmem>>, vector<8x128xf32>
    %cst_17 = arith.constant dense<0.000000e+00> : vector<8x128xf32>
    %40 = tpu.matmul %35, %7, %cst_17 {dimension_numbers = #tpu.dot_dimension_numbers<[1], [0], [0], [1], [0, 0, 1, 1], [], []>} : vector<8x32xf32>, vector<32x128xf32>, vector<8x128xf32> -> vector<8x128xf32>
    %41 = vector.extract_strided_slice %39 {offsets = [0, 0], sizes = [8, 64], strides = [1, 1]} : vector<8x128xf32> to vector<8x64xf32>
    %42 = vector.extract_strided_slice %40 {offsets = [0, 0], sizes = [8, 64], strides = [1, 1]} : vector<8x128xf32> to vector<8x64xf32>
    %43 = arith.addf %41, %42 : vector<8x64xf32>
    %44 = arith.negf %43 : vector<8x64xf32>
    %45 = math.exp %44 : vector<8x64xf32>
    %cst_18 = arith.constant 1.000000e+00 : f32
    %46 = vector.broadcast %cst_18 : f32 to vector<8x64xf32>
    %47 = arith.addf %46, %45 : vector<8x64xf32>
    %48 = arith.divf %46, %47 : vector<8x64xf32>
    %49 = vector.extract_strided_slice %48 {offsets = [0, 0], sizes = [8, 32], strides = [1, 1]} : vector<8x64xf32> to vector<8x32xf32>
    %50 = vector.extract_strided_slice %48 {offsets = [0, 32], sizes = [8, 32], strides = [1, 1]} : vector<8x64xf32> to vector<8x32xf32>
    %51 = vector.extract_strided_slice %39 {offsets = [0, 64], sizes = [8, 32], strides = [1, 1]} : vector<8x128xf32> to vector<8x32xf32>
    %52 = vector.extract_strided_slice %40 {offsets = [0, 64], sizes = [8, 32], strides = [1, 1]} : vector<8x128xf32> to vector<8x32xf32>
    %53 = arith.addf %52, %10 : vector<8x32xf32>
    %54 = arith.mulf %49, %53 : vector<8x32xf32>
    %55 = arith.addf %51, %54 : vector<8x32xf32>
    %56 = math.tanh %55 : vector<8x32xf32>
    %57 = arith.subf %35, %56 : vector<8x32xf32>
    %58 = arith.mulf %50, %57 : vector<8x32xf32>
    %59 = arith.addf %56, %58 : vector<8x32xf32>
    %c2_i32 = arith.constant 2 : i32
    %c8_i32_19 = arith.constant 8 : i32
    %60 = arith.muli %c2_i32, %c8_i32_19 : i32
    %61 = tpu.assume_multiple %60, 8 : i32
    %62 = arith.index_cast %61 : i32 to index
    %c0_20 = arith.constant 0 : index
    %63 = vector.load %arg8[%62, %c0_20] : memref<64x128xf32, #tpu.memory_space<vmem>>, vector<8x128xf32>
    %cst_21 = arith.constant dense<0.000000e+00> : vector<8x128xf32>
    %64 = tpu.matmul %59, %7, %cst_21 {dimension_numbers = #tpu.dot_dimension_numbers<[1], [0], [0], [1], [0, 0, 1, 1], [], []>} : vector<8x32xf32>, vector<32x128xf32>, vector<8x128xf32> -> vector<8x128xf32>
    %65 = vector.extract_strided_slice %63 {offsets = [0, 0], sizes = [8, 64], strides = [1, 1]} : vector<8x128xf32> to vector<8x64xf32>
    %66 = vector.extract_strided_slice %64 {offsets = [0, 0], sizes = [8, 64], strides = [1, 1]} : vector<8x128xf32> to vector<8x64xf32>
    %67 = arith.addf %65, %66 : vector<8x64xf32>
    %68 = arith.negf %67 : vector<8x64xf32>
    %69 = math.exp %68 : vector<8x64xf32>
    %cst_22 = arith.constant 1.000000e+00 : f32
    %70 = vector.broadcast %cst_22 : f32 to vector<8x64xf32>
    %71 = arith.addf %70, %69 : vector<8x64xf32>
    %72 = arith.divf %70, %71 : vector<8x64xf32>
    %73 = vector.extract_strided_slice %72 {offsets = [0, 0], sizes = [8, 32], strides = [1, 1]} : vector<8x64xf32> to vector<8x32xf32>
    %74 = vector.extract_strided_slice %72 {offsets = [0, 32], sizes = [8, 32], strides = [1, 1]} : vector<8x64xf32> to vector<8x32xf32>
    %75 = vector.extract_strided_slice %63 {offsets = [0, 64], sizes = [8, 32], strides = [1, 1]} : vector<8x128xf32> to vector<8x32xf32>
    %76 = vector.extract_strided_slice %64 {offsets = [0, 64], sizes = [8, 32], strides = [1, 1]} : vector<8x128xf32> to vector<8x32xf32>
    %77 = arith.addf %76, %10 : vector<8x32xf32>
    %78 = arith.mulf %73, %77 : vector<8x32xf32>
    %79 = arith.addf %75, %78 : vector<8x32xf32>
    %80 = math.tanh %79 : vector<8x32xf32>
    %81 = arith.subf %59, %80 : vector<8x32xf32>
    %82 = arith.mulf %74, %81 : vector<8x32xf32>
    %83 = arith.addf %80, %82 : vector<8x32xf32>
    %c3_i32 = arith.constant 3 : i32
    %c8_i32_23 = arith.constant 8 : i32
    %84 = arith.muli %c3_i32, %c8_i32_23 : i32
    %85 = tpu.assume_multiple %84, 8 : i32
    %86 = arith.index_cast %85 : i32 to index
    %c0_24 = arith.constant 0 : index
    %87 = vector.load %arg8[%86, %c0_24] : memref<64x128xf32, #tpu.memory_space<vmem>>, vector<8x128xf32>
    %cst_25 = arith.constant dense<0.000000e+00> : vector<8x128xf32>
    %88 = tpu.matmul %83, %7, %cst_25 {dimension_numbers = #tpu.dot_dimension_numbers<[1], [0], [0], [1], [0, 0, 1, 1], [], []>} : vector<8x32xf32>, vector<32x128xf32>, vector<8x128xf32> -> vector<8x128xf32>
    %89 = vector.extract_strided_slice %87 {offsets = [0, 0], sizes = [8, 64], strides = [1, 1]} : vector<8x128xf32> to vector<8x64xf32>
    %90 = vector.extract_strided_slice %88 {offsets = [0, 0], sizes = [8, 64], strides = [1, 1]} : vector<8x128xf32> to vector<8x64xf32>
    %91 = arith.addf %89, %90 : vector<8x64xf32>
    %92 = arith.negf %91 : vector<8x64xf32>
    %93 = math.exp %92 : vector<8x64xf32>
    %cst_26 = arith.constant 1.000000e+00 : f32
    %94 = vector.broadcast %cst_26 : f32 to vector<8x64xf32>
    %95 = arith.addf %94, %93 : vector<8x64xf32>
    %96 = arith.divf %94, %95 : vector<8x64xf32>
    %97 = vector.extract_strided_slice %96 {offsets = [0, 0], sizes = [8, 32], strides = [1, 1]} : vector<8x64xf32> to vector<8x32xf32>
    %98 = vector.extract_strided_slice %96 {offsets = [0, 32], sizes = [8, 32], strides = [1, 1]} : vector<8x64xf32> to vector<8x32xf32>
    %99 = vector.extract_strided_slice %87 {offsets = [0, 64], sizes = [8, 32], strides = [1, 1]} : vector<8x128xf32> to vector<8x32xf32>
    %100 = vector.extract_strided_slice %88 {offsets = [0, 64], sizes = [8, 32], strides = [1, 1]} : vector<8x128xf32> to vector<8x32xf32>
    %101 = arith.addf %100, %10 : vector<8x32xf32>
    %102 = arith.mulf %97, %101 : vector<8x32xf32>
    %103 = arith.addf %99, %102 : vector<8x32xf32>
    %104 = math.tanh %103 : vector<8x32xf32>
    %105 = arith.subf %83, %104 : vector<8x32xf32>
    %106 = arith.mulf %98, %105 : vector<8x32xf32>
    %107 = arith.addf %104, %106 : vector<8x32xf32>
    %c4_i32 = arith.constant 4 : i32
    %c8_i32_27 = arith.constant 8 : i32
    %108 = arith.muli %c4_i32, %c8_i32_27 : i32
    %109 = tpu.assume_multiple %108, 8 : i32
    %110 = arith.index_cast %109 : i32 to index
    %c0_28 = arith.constant 0 : index
    %111 = vector.load %arg8[%110, %c0_28] : memref<64x128xf32, #tpu.memory_space<vmem>>, vector<8x128xf32>
    %cst_29 = arith.constant dense<0.000000e+00> : vector<8x128xf32>
    %112 = tpu.matmul %107, %7, %cst_29 {dimension_numbers = #tpu.dot_dimension_numbers<[1], [0], [0], [1], [0, 0, 1, 1], [], []>} : vector<8x32xf32>, vector<32x128xf32>, vector<8x128xf32> -> vector<8x128xf32>
    %113 = vector.extract_strided_slice %111 {offsets = [0, 0], sizes = [8, 64], strides = [1, 1]} : vector<8x128xf32> to vector<8x64xf32>
    %114 = vector.extract_strided_slice %112 {offsets = [0, 0], sizes = [8, 64], strides = [1, 1]} : vector<8x128xf32> to vector<8x64xf32>
    %115 = arith.addf %113, %114 : vector<8x64xf32>
    %116 = arith.negf %115 : vector<8x64xf32>
    %117 = math.exp %116 : vector<8x64xf32>
    %cst_30 = arith.constant 1.000000e+00 : f32
    %118 = vector.broadcast %cst_30 : f32 to vector<8x64xf32>
    %119 = arith.addf %118, %117 : vector<8x64xf32>
    %120 = arith.divf %118, %119 : vector<8x64xf32>
    %121 = vector.extract_strided_slice %120 {offsets = [0, 0], sizes = [8, 32], strides = [1, 1]} : vector<8x64xf32> to vector<8x32xf32>
    %122 = vector.extract_strided_slice %120 {offsets = [0, 32], sizes = [8, 32], strides = [1, 1]} : vector<8x64xf32> to vector<8x32xf32>
    %123 = vector.extract_strided_slice %111 {offsets = [0, 64], sizes = [8, 32], strides = [1, 1]} : vector<8x128xf32> to vector<8x32xf32>
    %124 = vector.extract_strided_slice %112 {offsets = [0, 64], sizes = [8, 32], strides = [1, 1]} : vector<8x128xf32> to vector<8x32xf32>
    %125 = arith.addf %124, %10 : vector<8x32xf32>
    %126 = arith.mulf %121, %125 : vector<8x32xf32>
    %127 = arith.addf %123, %126 : vector<8x32xf32>
    %128 = math.tanh %127 : vector<8x32xf32>
    %129 = arith.subf %107, %128 : vector<8x32xf32>
    %130 = arith.mulf %122, %129 : vector<8x32xf32>
    %131 = arith.addf %128, %130 : vector<8x32xf32>
    %c5_i32 = arith.constant 5 : i32
    %c8_i32_31 = arith.constant 8 : i32
    %132 = arith.muli %c5_i32, %c8_i32_31 : i32
    %133 = tpu.assume_multiple %132, 8 : i32
    %134 = arith.index_cast %133 : i32 to index
    %c0_32 = arith.constant 0 : index
    %135 = vector.load %arg8[%134, %c0_32] : memref<64x128xf32, #tpu.memory_space<vmem>>, vector<8x128xf32>
    %cst_33 = arith.constant dense<0.000000e+00> : vector<8x128xf32>
    %136 = tpu.matmul %131, %7, %cst_33 {dimension_numbers = #tpu.dot_dimension_numbers<[1], [0], [0], [1], [0, 0, 1, 1], [], []>} : vector<8x32xf32>, vector<32x128xf32>, vector<8x128xf32> -> vector<8x128xf32>
    %137 = vector.extract_strided_slice %135 {offsets = [0, 0], sizes = [8, 64], strides = [1, 1]} : vector<8x128xf32> to vector<8x64xf32>
    %138 = vector.extract_strided_slice %136 {offsets = [0, 0], sizes = [8, 64], strides = [1, 1]} : vector<8x128xf32> to vector<8x64xf32>
    %139 = arith.addf %137, %138 : vector<8x64xf32>
    %140 = arith.negf %139 : vector<8x64xf32>
    %141 = math.exp %140 : vector<8x64xf32>
    %cst_34 = arith.constant 1.000000e+00 : f32
    %142 = vector.broadcast %cst_34 : f32 to vector<8x64xf32>
    %143 = arith.addf %142, %141 : vector<8x64xf32>
    %144 = arith.divf %142, %143 : vector<8x64xf32>
    %145 = vector.extract_strided_slice %144 {offsets = [0, 0], sizes = [8, 32], strides = [1, 1]} : vector<8x64xf32> to vector<8x32xf32>
    %146 = vector.extract_strided_slice %144 {offsets = [0, 32], sizes = [8, 32], strides = [1, 1]} : vector<8x64xf32> to vector<8x32xf32>
    %147 = vector.extract_strided_slice %135 {offsets = [0, 64], sizes = [8, 32], strides = [1, 1]} : vector<8x128xf32> to vector<8x32xf32>
    %148 = vector.extract_strided_slice %136 {offsets = [0, 64], sizes = [8, 32], strides = [1, 1]} : vector<8x128xf32> to vector<8x32xf32>
    %149 = arith.addf %148, %10 : vector<8x32xf32>
    %150 = arith.mulf %145, %149 : vector<8x32xf32>
    %151 = arith.addf %147, %150 : vector<8x32xf32>
    %152 = math.tanh %151 : vector<8x32xf32>
    %153 = arith.subf %131, %152 : vector<8x32xf32>
    %154 = arith.mulf %146, %153 : vector<8x32xf32>
    %155 = arith.addf %152, %154 : vector<8x32xf32>
    %c6_i32 = arith.constant 6 : i32
    %c8_i32_35 = arith.constant 8 : i32
    %156 = arith.muli %c6_i32, %c8_i32_35 : i32
    %157 = tpu.assume_multiple %156, 8 : i32
    %158 = arith.index_cast %157 : i32 to index
    %c0_36 = arith.constant 0 : index
    %159 = vector.load %arg8[%158, %c0_36] : memref<64x128xf32, #tpu.memory_space<vmem>>, vector<8x128xf32>
    %cst_37 = arith.constant dense<0.000000e+00> : vector<8x128xf32>
    %160 = tpu.matmul %155, %7, %cst_37 {dimension_numbers = #tpu.dot_dimension_numbers<[1], [0], [0], [1], [0, 0, 1, 1], [], []>} : vector<8x32xf32>, vector<32x128xf32>, vector<8x128xf32> -> vector<8x128xf32>
    %161 = vector.extract_strided_slice %159 {offsets = [0, 0], sizes = [8, 64], strides = [1, 1]} : vector<8x128xf32> to vector<8x64xf32>
    %162 = vector.extract_strided_slice %160 {offsets = [0, 0], sizes = [8, 64], strides = [1, 1]} : vector<8x128xf32> to vector<8x64xf32>
    %163 = arith.addf %161, %162 : vector<8x64xf32>
    %164 = arith.negf %163 : vector<8x64xf32>
    %165 = math.exp %164 : vector<8x64xf32>
    %cst_38 = arith.constant 1.000000e+00 : f32
    %166 = vector.broadcast %cst_38 : f32 to vector<8x64xf32>
    %167 = arith.addf %166, %165 : vector<8x64xf32>
    %168 = arith.divf %166, %167 : vector<8x64xf32>
    %169 = vector.extract_strided_slice %168 {offsets = [0, 0], sizes = [8, 32], strides = [1, 1]} : vector<8x64xf32> to vector<8x32xf32>
    %170 = vector.extract_strided_slice %168 {offsets = [0, 32], sizes = [8, 32], strides = [1, 1]} : vector<8x64xf32> to vector<8x32xf32>
    %171 = vector.extract_strided_slice %159 {offsets = [0, 64], sizes = [8, 32], strides = [1, 1]} : vector<8x128xf32> to vector<8x32xf32>
    %172 = vector.extract_strided_slice %160 {offsets = [0, 64], sizes = [8, 32], strides = [1, 1]} : vector<8x128xf32> to vector<8x32xf32>
    %173 = arith.addf %172, %10 : vector<8x32xf32>
    %174 = arith.mulf %169, %173 : vector<8x32xf32>
    %175 = arith.addf %171, %174 : vector<8x32xf32>
    %176 = math.tanh %175 : vector<8x32xf32>
    %177 = arith.subf %155, %176 : vector<8x32xf32>
    %178 = arith.mulf %170, %177 : vector<8x32xf32>
    %179 = arith.addf %176, %178 : vector<8x32xf32>
    %c7_i32 = arith.constant 7 : i32
    %c8_i32_39 = arith.constant 8 : i32
    %180 = arith.muli %c7_i32, %c8_i32_39 : i32
    %181 = tpu.assume_multiple %180, 8 : i32
    %182 = arith.index_cast %181 : i32 to index
    %c0_40 = arith.constant 0 : index
    %183 = vector.load %arg8[%182, %c0_40] : memref<64x128xf32, #tpu.memory_space<vmem>>, vector<8x128xf32>
    %cst_41 = arith.constant dense<0.000000e+00> : vector<8x128xf32>
    %184 = tpu.matmul %179, %7, %cst_41 {dimension_numbers = #tpu.dot_dimension_numbers<[1], [0], [0], [1], [0, 0, 1, 1], [], []>} : vector<8x32xf32>, vector<32x128xf32>, vector<8x128xf32> -> vector<8x128xf32>
    %185 = vector.extract_strided_slice %183 {offsets = [0, 0], sizes = [8, 64], strides = [1, 1]} : vector<8x128xf32> to vector<8x64xf32>
    %186 = vector.extract_strided_slice %184 {offsets = [0, 0], sizes = [8, 64], strides = [1, 1]} : vector<8x128xf32> to vector<8x64xf32>
    %187 = arith.addf %185, %186 : vector<8x64xf32>
    %188 = arith.negf %187 : vector<8x64xf32>
    %189 = math.exp %188 : vector<8x64xf32>
    %cst_42 = arith.constant 1.000000e+00 : f32
    %190 = vector.broadcast %cst_42 : f32 to vector<8x64xf32>
    %191 = arith.addf %190, %189 : vector<8x64xf32>
    %192 = arith.divf %190, %191 : vector<8x64xf32>
    %193 = vector.extract_strided_slice %192 {offsets = [0, 0], sizes = [8, 32], strides = [1, 1]} : vector<8x64xf32> to vector<8x32xf32>
    %194 = vector.extract_strided_slice %192 {offsets = [0, 32], sizes = [8, 32], strides = [1, 1]} : vector<8x64xf32> to vector<8x32xf32>
    %195 = vector.extract_strided_slice %183 {offsets = [0, 64], sizes = [8, 32], strides = [1, 1]} : vector<8x128xf32> to vector<8x32xf32>
    %196 = vector.extract_strided_slice %184 {offsets = [0, 64], sizes = [8, 32], strides = [1, 1]} : vector<8x128xf32> to vector<8x32xf32>
    %197 = arith.addf %196, %10 : vector<8x32xf32>
    %198 = arith.mulf %193, %197 : vector<8x32xf32>
    %199 = arith.addf %195, %198 : vector<8x32xf32>
    %200 = math.tanh %199 : vector<8x32xf32>
    %201 = arith.subf %179, %200 : vector<8x32xf32>
    %202 = arith.mulf %194, %201 : vector<8x32xf32>
    %203 = arith.addf %200, %202 : vector<8x32xf32>
    %c8_i32_43 = arith.constant 8 : i32
    %c0_44 = arith.constant 0 : index
    %c0_45 = arith.constant 0 : index
    %204 = vector.load %arg5[%c0_44, %c0_45] : memref<32x128xf32, #tpu.memory_space<vmem>>, vector<32x128xf32>
    %cst_46 = arith.constant dense<0.000000e+00> : vector<8x128xf32>
    %205 = tpu.matmul %203, %204, %cst_46 {dimension_numbers = #tpu.dot_dimension_numbers<[1], [0], [0], [1], [0, 0, 1, 1], [], []>} : vector<8x32xf32>, vector<32x128xf32>, vector<8x128xf32> -> vector<8x128xf32>
    %c0_47 = arith.constant 0 : index
    %c0_48 = arith.constant 0 : index
    %206 = vector.load %arg6[%c0_47, %c0_48] : memref<1x128xf32, #tpu.memory_space<vmem>>, vector<1x128xf32>
    %207 = vector.broadcast %206 : vector<1x128xf32> to vector<8x128xf32>
    %208 = arith.addf %205, %207 : vector<8x128xf32>
    %c0_49 = arith.constant 0 : index
    %c0_50 = arith.constant 0 : index
    %209 = vector.load %arg7[%c0_49, %c0_50] : memref<8x128xf32, #tpu.memory_space<vmem>>, vector<8x128xf32>
    tpu.vector_store %arg7[%c0_49, %c0_50], %208 {strides = array<i32>} : memref<8x128xf32, #tpu.memory_space<vmem>>, vector<8x128xf32>,
    return
  }
}

</mosaic_0001>

<bundles_post_ra>
// kernel: tpu_custom_call.1
= control target key start
LH: loop header
LB: loop body
LE: loop exit
PB: predicated region body
PF: predicated region fallthrough
CT: control target
= control target key end

     0   :  { %v1430_v3 = vmov 0.0   ;;  %s1732_s0 = inlined_call_operand.vmem [shape: f32[64,32], index: 0, kind: input, shape index: {}]   ;;  %s1733_s1 = inlined_call_operand.vmem [shape: f32[32,128], index: 1, kind: input, shape index: {}]   ;;  %s1734_s2 = inlined_call_operand.vmem [shape: f32[1,128], index: 2, kind: input, shape index: {}]   ;;  %s1735_s3 = inlined_call_operand.vmem [shape: f32[32,128], index: 3, kind: input, shape index: {}]   ;;  %s1736_s4 = inlined_call_operand.vmem [shape: f32[1,32], index: 4, kind: input, shape index: {}]   ;;  %s1737_s5 = inlined_call_operand.vmem [shape: f32[32,128], index: 5, kind: input, shape index: {}]   ;;  %s1738_s6 = inlined_call_operand.vmem [shape: f32[1,128], index: 6, kind: input, shape index: {}]   ;;  %s1739_s7 = inlined_call_operand.hbm [shape: f32[8,128], index: 7, kind: output, shape index: {}]  }
   0x1   :  { %v38_v0 = vld [vmem:[%s1733_s1 + $0x18] sm:$0xff]  ;;  %v37_v2 = vld [vmem:[%s1733_s1 + $0x10] sm:$0xff]  ;;  %1255 = vmatprep.subr.mxu1 %v1430_v3  ;;  %v36_v5 = vld [vmem:[%s1733_s1 + $0x8] sm:$0xff] }
   0x2   :  { %v1482_v1 = vld [vmem:[%s1735_s3 + $0x18] sm:$0xff]  ;;  %1235 = vmatprep.subr.mxu0 %v38_v0  ;;  %v1491_v4 = vld [vmem:[%s1735_s3 + $0x10] sm:$0xff]  ;;  %v1501_v6 = vld [vmem:[%s1735_s3 + $0x8] sm:$0xff] }
   0x3   :  { %1236 = vmatpush3.msra.mxu0 %v38_v0  ;;  %1256 = vmatpush3.msra.mxu1 %v1482_v1 }
   0x4   :  { %1237 = vmatprep.subr.mxu0 %v37_v2  ;;  %1257 = vmatprep.subr.mxu1 %v1430_v3 }
   0x5   :  { %12 = vsyncpa [#allocation4], 0  ;;  %1238 = vmatpush3.msra.mxu0 %v37_v2  ;;  %1258 = vmatpush3.msra.mxu1 %v1491_v4  ;;  %v35_v7 = vld [vmem:[%s1733_s1] sm:$0xff]  ;;  %vm46_vm0 = vcmask 261120   ;;  %v28_v10 = vld [vmem:[%s1732_s0 + $0x8] sm:$0xff]  ;;  %vm1431_vm1 = vmmov 0  }
   0x6   :  { %1239 = vmatprep.subr.mxu0 %v36_v5  ;;  %1259 = vmatprep.subr.mxu1 %v1430_v3  ;;  %v27_v8 = vld [vmem:[%s1732_s0] sm:$0xff]  ;;  %s1434_s23 = smov 32   ;;  %v29_v51 = vld [vmem:[%s1732_s0 + $0x10] sm:$0xff]  ;;  %v30_v52 = vld [vmem:[%s1732_s0 + $0x18] sm:$0xff] }
   0x7   :  { %1240 = vmatpush3.msra.mxu0 %v36_v5  ;;  %1260 = vmatpush3.msra.mxu1 %v1501_v6  ;;  %v1515_v9 = vld [vmem:[%s1735_s3] sm:$0xff]  ;;  %s1432_s3 = smov 64   ;;  %v32_v54 = vld [vmem:[%s1732_s0 + $0x28] sm:$0xff]  ;;  %v33_v55 = vld [vmem:[%s1732_s0 + $0x30] sm:$0xff] }
   0x8   :  { %1241 = vmatprep.subr.mxu0 %v35_v7  ;;  %1261 = vmatprep.subr.mxu1 %v1430_v3  ;;  %v1160_v11 = vld [vmem:[%s1736_s4] ss:$0 sm:$0xff]  ;;  %v34_v56 = vld [vmem:[%s1732_s0 + $0x38] sm:$0xff] }
   0x9   :  { %1242 = vmatpush3.msra.mxu0 %v35_v7  ;;  %1243 = vmatprep.mubr.msk.f32.mxu0 %vm46_vm0, %v27_v8  ;;  %v1558_v17 = vld [vmem:[%s1734_s2] ss:$0 sm:$0xff]  ;;  %s1433_s2 = smov 96  }
   0xa   :  { %1262 = vmatpush3.msra.mxu1 %v1515_v9  ;;  %1263 = vmatprep.mubr.msk.f32.mxu1 %vm1431_vm1, %v1430_v3  ;;  %v31_v53 = vld [vmem:[%s1732_s0 + $0x20] sm:$0xff] }
   0xb   :  { %1244 = vmatmul.mubr.msk.f32.vlgmr.msra.gmra.mxu0 %vm46_vm0, %v28_v10  ;;  %1264 = vmatmul.mubr.f32.vlgmr.msra.gmra.mxu1 %v1430_v3 }
   0xc   :  { %275 = vrot.lane.b32.xlu0 %v1160_v11, %s1432_s3  ;;  %1266 = vmatprep.subr.mxu1 %v1430_v3 }
   0xd   :  { %1267 = vmatpush3.msra.mxu1 %v1482_v1  ;;  %1274 = vmatprep.mubr.msk.f32.mxu1 %vm1431_vm1, %v1430_v3 }
   0xe   :  { %1268 = vmatprep.subr.mxu1 %v1430_v3  ;;  %1277 = vmatprep.subr.mxu0 %v1430_v3 }
   0xf   :  { %1269 = vmatpush3.msra.mxu1 %v1491_v4  ;;  %1278 = vmatpush3.msra.mxu0 %v1482_v1 }
  0x10   :  { %1270 = vmatprep.subr.mxu1 %v1430_v3  ;;  %1279 = vmatprep.subr.mxu0 %v1430_v3 }
  0x11   :  { %1271 = vmatpush3.msra.mxu1 %v1501_v6  ;;  %1280 = vmatpush3.msra.mxu0 %v1491_v4 }
  0x12   :  { %1272 = vmatprep.subr.mxu1 %v1430_v3  ;;  %1281 = vmatprep.subr.mxu0 %v1430_v3 }
  0x13   :  { %1273 = vmatpush3.msra.mxu1 %v1515_v9  ;;  %1282 = vmatpush3.msra.mxu0 %v1501_v6 }
  0x14   :  { %1283 = vmatprep.subr.mxu0 %v1430_v3  ;;  %1288 = vmatprep.subr.mxu1 %v1430_v3 }
  0x15   :  { %1284 = vmatpush3.msra.mxu0 %v1515_v9  ;;  %1246 = vmatprep.mubr.msk.f32.mxu0 %vm46_vm0, %v29_v51 }
  0x16   :  { %1299 = vmatprep.subr.mxu0 %v1430_v3  ;;  %1247 = vmatmul.mubr.msk.f32.gmra.mxu0 %vm46_vm0, %v30_v52 }
  0x17   :  { %1249 = vmatprep.mubr.msk.f32.mxu0 %vm46_vm0, %v31_v53 }
  0x1a   :  { %1250 = vmatmul.mubr.msk.f32.gmra.mxu0 %vm46_vm0, %v32_v54 }
  0x1b   :  { %1252 = vmatprep.mubr.msk.f32.mxu0 %vm46_vm0, %v33_v55 }
  0x1e   :  { %1253 = vmatmul.mubr.msk.f32.gmra.mxu0 %vm46_vm0, %v34_v56 }
  0x1f   :  { %1285 = vmatprep.mubr.msk.f32.mxu0 %vm1431_vm1, %v1430_v3 }
  0x7e   :  { %v1551_v12 = vpop.permute.xlu0 %275 }
  0xcb   :  { %v264_v13 = vpop.f32.mrf.mxu1  ;;  %v1245_v16 = vpop.f32.mrf.mxu0 }
  0xcc   :  { %v278_v14 = vadd.f32 %v1551_v12, %v264_v13  ;;  %v143_v39 = vadd.f32 %v1245_v16, %v1558_v17 }
  0xcd   :  { %v1265_v15 = vpop.f32.mrf.mxu1  ;;  %v137_v18 = vpop.f32.mrf.mxu0 }
  0xce   :  { %280 = vrot.lane.b32.xlu0 %v278_v14, %s1432_s3  ;;  %v138_v19 = vadd.f32 %v1558_v17, %v137_v18 }
  0xd0   :  { %v268_v20 = vadd.f32 %v264_v13, %v138_v19 }
  0xd2   :  { %v1161_v21 = vmul.f32 -1.442695, %v268_v20 }
  0xd4   :  { %1360 = vpow2.f32 %v1161_v21 }
  0xd6   :  { %v1248_v62 = vpop.f32.mrf.mxu0 }
  0xd8   :  { %v147_v63 = vpop.f32.mrf.mxu0 }
  0xd9   :  { %v148_v13 = vadd.f32 %v1558_v17, %v147_v63 }
  0xda   :  { %v1620_v0 = vpop.f32.mrf.mxu0 }
  0xdc   :  { %v1622_v2 = vpop.f32.mrf.mxu0 }
  0xdd   :  { %v158_v54 = vadd.f32 %v1558_v17, %v1622_v2 }
  0xde   :  { %v1624_v5 = vpop.f32.mrf.mxu0 }
  0xe0   :  { %v1626_v7 = vpop.f32.mrf.mxu0 }
  0xe1   :  { %v1361_v22 = vpop.eup %1360 }
  0xe2   :  { %v272_v23 = vadd.f32 1.0, %v1361_v22 }
  0xe4   :  { %1362 = vrcp.f32 %v272_v23 }
  0xf1   :  { %v1363_v24 = vpop.eup %1362 }
 0x140   :  { %v281_v25 = vpop.permute.xlu0 %280 }
 0x141   :  { %v283_v26 = vmul.f32 %v1363_v24, %v281_v25 }
 0x143   :  { %285 = vrot.lane.b32.xlu1 %v283_v26, %s1432_s3 }
 0x1b5   :  { %v286_v27 = vpop.permute.xlu1 %285 }
 0x1b6   :  { %v288_v28 = vadd.f32 %v286_v27, %v138_v19 }
 0x1b8   :  { %1364 = vtanh.f32 %v288_v28 }
 0x1c5   :  { %v1365_v29 = vpop.eup %1364 }
 0x1c6   :  { %v290_v30 = vsub.f32 0.0, %v1365_v29 }
 0x1c8   :  { %292 = vrot.lane.b32.xlu1 %v290_v30, %s1433_s2 }
 0x23a   :  { %v293_v31 = vpop.permute.xlu1 %292 }
 0x23b   :  { %v295_v32 = vmul.f32 %v1363_v24, %v293_v31 }
 0x23d   :  { %297 = vrot.lane.b32.xlu0 %v295_v32, %s1434_s23 }
 0x2af   :  { %v298_v33 = vpop.permute.xlu0 %297 }
 0x2b0   :  { %v300_v34 = vadd.f32 %v1365_v29, %v298_v33 }
 0x2b2   :  { %304 = vrot.lane.b32.xlu1 %v300_v34, %s1432_s3 }
 0x324   :  { %v305_v35 = vpop.permute.xlu1 %304 }
 0x325   :  { %1275 = vmatmul.mubr.msk.f32.vlgmr.msra.gmra.mxu1 %vm46_vm0, %v305_v35 }
 0x326   :  { %1289 = vmatpush3.msra.mxu1 %v1482_v1  ;;  %1296 = vmatprep.mubr.msk.f32.mxu1 %vm1431_vm1, %v1430_v3 }
 0x327   :  { %1290 = vmatprep.subr.mxu1 %v1430_v3 }
 0x328   :  { %1291 = vmatpush3.msra.mxu1 %v1491_v4 }
 0x329   :  { %1292 = vmatprep.subr.mxu1 %v1430_v3 }
 0x32a   :  { %1293 = vmatpush3.msra.mxu1 %v1501_v6 }
 0x32b   :  { %1294 = vmatprep.subr.mxu1 %v1430_v3 }
 0x32c   :  { %1295 = vmatpush3.msra.mxu1 %v1515_v9 }
 0x32d   :  { %1310 = vmatprep.subr.mxu1 %v1430_v3 }
 0x3e5   :  { %v374_v36 = vpop.f32.mrf.mxu1 }
 0x3e6   :  { %v385_v37 = vadd.f32 %v374_v36, %v1551_v12  ;;  %v378_v40 = vadd.f32 %v374_v36, %v143_v39 }
 0x3e7   :  { %v1276_v38 = vpop.f32.mrf.mxu1 }
 0x3e8   :  { %387 = vrot.lane.b32.xlu0 %v385_v37, %s1432_s3  ;;  %v1163_v41 = vmul.f32 -1.442695, %v378_v40 }
 0x3ea   :  { %1366 = vpow2.f32 %v1163_v41 }
 0x3f7   :  { %v1367_v42 = vpop.eup %1366 }
 0x3f8   :  { %v382_v43 = vadd.f32 1.0, %v1367_v42 }
 0x3fa   :  { %1368 = vrcp.f32 %v382_v43 }
 0x407   :  { %v1369_v44 = vpop.eup %1368 }
 0x45a   :  { %v388_v45 = vpop.permute.xlu0 %387 }
 0x45b   :  { %v390_v46 = vmul.f32 %v1369_v44, %v388_v45 }
 0x45d   :  { %392 = vrot.lane.b32.xlu1 %v390_v46, %s1432_s3 }
 0x4cf   :  { %v393_v47 = vpop.permute.xlu1 %392 }
 0x4d0   :  { %v395_v48 = vadd.f32 %v393_v47, %v143_v39 }
 0x4d2   :  { %1370 = vtanh.f32 %v395_v48 }
 0x4df   :  { %v1371_v49 = vpop.eup %1370 }
 0x4e0   :  { %v397_v50 = vsub.f32 %v300_v34, %v1371_v49  ;;  %v153_v34 = vadd.f32 %v1248_v62, %v1558_v17 }
 0x4e2   :  { %399 = vrot.lane.b32.xlu0 %v397_v50, %s1433_s2 }
 0x554   :  { %v400_v57 = vpop.permute.xlu0 %399 }
 0x555   :  { %v402_v58 = vmul.f32 %v1369_v44, %v400_v57 }
 0x557   :  { %404 = vrot.lane.b32.xlu1 %v402_v58, %s1434_s23 }
 0x5c9   :  { %v405_v59 = vpop.permute.xlu1 %404 }
 0x5ca   :  { %v407_v60 = vadd.f32 %v1371_v49, %v405_v59 }
 0x5cc   :  { %411 = vrot.lane.b32.xlu0 %v407_v60, %s1432_s3 }
 0x63e   :  { %v412_v61 = vpop.permute.xlu0 %411 }
 0x63f   :  { %1286 = vmatmul.mubr.msk.f32.vlgmr.msra.gmra.mxu0 %vm46_vm0, %v412_v61 }
 0x640   :  { %1300 = vmatpush3.msra.mxu0 %v1482_v1  ;;  %1307 = vmatprep.mubr.msk.f32.mxu0 %vm1431_vm1, %v1430_v3 }
 0x641   :  { %1301 = vmatprep.subr.mxu0 %v1430_v3 }
 0x642   :  { %1302 = vmatpush3.msra.mxu0 %v1491_v4 }
 0x643   :  { %1303 = vmatprep.subr.mxu0 %v1430_v3 }
 0x644   :  { %1304 = vmatpush3.msra.mxu0 %v1501_v6 }
 0x645   :  { %1305 = vmatprep.subr.mxu0 %v1430_v3 }
 0x646   :  { %1306 = vmatpush3.msra.mxu0 %v1515_v9 }
 0x647   :  { %1321 = vmatprep.subr.mxu0 %v1430_v3 }
 0x6ff   :  { %v481_v8 = vpop.f32.mrf.mxu0 }
 0x700   :  { %v492_v10 = vadd.f32 %v481_v8, %v1551_v12  ;;  %v485_v14 = vadd.f32 %v481_v8, %v148_v13 }
 0x701   :  { %v1287_v11 = vpop.f32.mrf.mxu0 }
 0x702   :  { %494 = vrot.lane.b32.xlu1 %v492_v10, %s1432_s3  ;;  %v1165_v15 = vmul.f32 -1.442695, %v485_v14 }
 0x704   :  { %1372 = vpow2.f32 %v1165_v15 }
 0x711   :  { %v1373_v16 = vpop.eup %1372 }
 0x712   :  { %v489_v18 = vadd.f32 1.0, %v1373_v16 }
 0x714   :  { %1374 = vrcp.f32 %v489_v18 }
 0x721   :  { %v1375_v19 = vpop.eup %1374 }
 0x774   :  { %v495_v20 = vpop.permute.xlu1 %494 }
 0x775   :  { %v497_v21 = vmul.f32 %v1375_v19, %v495_v20 }
 0x777   :  { %499 = vrot.lane.b32.xlu0 %v497_v21, %s1432_s3 }
 0x7e9   :  { %v500_v22 = vpop.permute.xlu0 %499 }
 0x7ea   :  { %v502_v23 = vadd.f32 %v500_v22, %v148_v13 }
 0x7ec   :  { %1376 = vtanh.f32 %v502_v23 }
 0x7f9   :  { %v1377_v24 = vpop.eup %1376 }
 0x7fa   :  { %v504_v25 = vsub.f32 %v407_v60, %v1377_v24 }
 0x7fc   :  { %506 = vrot.lane.b32.xlu1 %v504_v25, %s1433_s2 }
 0x86e   :  { %v507_v26 = vpop.permute.xlu1 %506 }
 0x86f   :  { %v509_v27 = vmul.f32 %v1375_v19, %v507_v26 }
 0x871   :  { %511 = vrot.lane.b32.xlu0 %v509_v27, %s1434_s23 }
 0x8e3   :  { %v512_v28 = vpop.permute.xlu0 %511 }
 0x8e4   :  { %v514_v29 = vadd.f32 %v1377_v24, %v512_v28 }
 0x8e6   :  { %518 = vrot.lane.b32.xlu1 %v514_v29, %s1432_s3 }
 0x958   :  { %v519_v30 = vpop.permute.xlu1 %518 }
 0x959   :  { %1297 = vmatmul.mubr.msk.f32.vlgmr.msra.gmra.mxu1 %vm46_vm0, %v519_v30 }
 0x95a   :  { %1311 = vmatpush3.msra.mxu1 %v1482_v1  ;;  %1318 = vmatprep.mubr.msk.f32.mxu1 %vm1431_vm1, %v1430_v3 }
 0x95b   :  { %1312 = vmatprep.subr.mxu1 %v1430_v3 }
 0x95c   :  { %1313 = vmatpush3.msra.mxu1 %v1491_v4 }
 0x95d   :  { %1314 = vmatprep.subr.mxu1 %v1430_v3 }
 0x95e   :  { %1315 = vmatpush3.msra.mxu1 %v1501_v6 }
 0x95f   :  { %1316 = vmatprep.subr.mxu1 %v1430_v3 }
 0x960   :  { %1317 = vmatpush3.msra.mxu1 %v1515_v9 }
 0x961   :  { %1332 = vmatprep.subr.mxu1 %v1430_v3 }
 0xa19   :  { %v588_v31 = vpop.f32.mrf.mxu1 }
 0xa1a   :  { %v599_v32 = vadd.f32 %v588_v31, %v1551_v12  ;;  %v592_v35 = vadd.f32 %v588_v31, %v153_v34 }
 0xa1b   :  { %v1298_v33 = vpop.f32.mrf.mxu1 }
 0xa1c   :  { %601 = vrot.lane.b32.xlu0 %v599_v32, %s1432_s3  ;;  %v1167_v36 = vmul.f32 -1.442695, %v592_v35  ;;  %v168_v35 = vadd.f32 %v1558_v17, %v1626_v7 }
 0xa1e   :  { %1378 = vpow2.f32 %v1167_v36 }
 0xa2b   :  { %v1379_v37 = vpop.eup %1378 }
 0xa2c   :  { %v596_v38 = vadd.f32 1.0, %v1379_v37 }
 0xa2e   :  { %1380 = vrcp.f32 %v596_v38 }
 0xa3b   :  { %v1381_v39 = vpop.eup %1380 }
 0xa8e   :  { %v602_v40 = vpop.permute.xlu0 %601 }
 0xa8f   :  { %v604_v41 = vmul.f32 %v1381_v39, %v602_v40 }
 0xa91   :  { %606 = vrot.lane.b32.xlu1 %v604_v41, %s1432_s3 }
 0xb03   :  { %v607_v42 = vpop.permute.xlu1 %606 }
 0xb04   :  { %v609_v43 = vadd.f32 %v607_v42, %v153_v34 }
 0xb06   :  { %1382 = vtanh.f32 %v609_v43 }
 0xb13   :  { %v1383_v44 = vpop.eup %1382 }
 0xb14   :  { %v611_v45 = vsub.f32 %v514_v29, %v1383_v44 }
 0xb16   :  { %613 = vrot.lane.b32.xlu0 %v611_v45, %s1433_s2 }
 0xb88   :  { %v614_v46 = vpop.permute.xlu0 %613 }
 0xb89   :  { %v616_v47 = vmul.f32 %v1381_v39, %v614_v46 }
 0xb8b   :  { %618 = vrot.lane.b32.xlu1 %v616_v47, %s1434_s23 }
 0xbfd   :  { %v619_v48 = vpop.permute.xlu1 %618 }
 0xbfe   :  { %v621_v49 = vadd.f32 %v1383_v44, %v619_v48 }
 0xc00   :  { %625 = vrot.lane.b32.xlu0 %v621_v49, %s1432_s3 }
 0xc72   :  { %v626_v50 = vpop.permute.xlu0 %625 }
 0xc73   :  { %1308 = vmatmul.mubr.msk.f32.vlgmr.msra.gmra.mxu0 %vm46_vm0, %v626_v50 }
 0xc74   :  { %1322 = vmatpush3.msra.mxu0 %v1482_v1  ;;  %1329 = vmatprep.mubr.msk.f32.mxu0 %vm1431_vm1, %v1430_v3 }
 0xc75   :  { %1323 = vmatprep.subr.mxu0 %v1430_v3 }
 0xc76   :  { %1324 = vmatpush3.msra.mxu0 %v1491_v4 }
 0xc77   :  { %1325 = vmatprep.subr.mxu0 %v1430_v3 }
 0xc78   :  { %1326 = vmatpush3.msra.mxu0 %v1501_v6 }
 0xc79   :  { %1327 = vmatprep.subr.mxu0 %v1430_v3 }
 0xc7a   :  { %1328 = vmatpush3.msra.mxu0 %v1515_v9 }
 0xc7b   :  { %1343 = vmatprep.subr.mxu0 %v1430_v3 }
 0xd33   :  { %v695_v51 = vpop.f32.mrf.mxu0 }
 0xd34   :  { %v706_v52 = vadd.f32 %v695_v51, %v1551_v12  ;;  %v699_v55 = vadd.f32 %v695_v51, %v158_v54 }
 0xd35   :  { %v1309_v53 = vpop.f32.mrf.mxu0 }
 0xd36   :  { %708 = vrot.lane.b32.xlu1 %v706_v52, %s1432_s3  ;;  %v1169_v56 = vmul.f32 -1.442695, %v699_v55 }
 0xd38   :  { %1384 = vpow2.f32 %v1169_v56 }
 0xd45   :  { %v1385_v57 = vpop.eup %1384 }
 0xd46   :  { %v703_v58 = vadd.f32 1.0, %v1385_v57 }
 0xd48   :  { %1386 = vrcp.f32 %v703_v58 }
 0xd55   :  { %v1387_v59 = vpop.eup %1386 }
 0xda8   :  { %v709_v60 = vpop.permute.xlu1 %708 }
 0xda9   :  { %v711_v61 = vmul.f32 %v1387_v59, %v709_v60 }
 0xdab   :  { %713 = vrot.lane.b32.xlu0 %v711_v61, %s1432_s3 }
 0xe1d   :  { %v714_v62 = vpop.permute.xlu0 %713 }
 0xe1e   :  { %v716_v63 = vadd.f32 %v714_v62, %v158_v54  ;;  %v173_v54 = vadd.f32 %v1624_v5, %v1558_v17  ;;  %v1052_v5 = vld [vmem:[%s1737_s5 + $0x10] sm:$0xff] }
 0xe20   :  { %1388 = vtanh.f32 %v716_v63 }
 0xe2d   :  { %v1389_v8 = vpop.eup %1388 }
 0xe2e   :  { %v718_v10 = vsub.f32 %v621_v49, %v1389_v8 }
 0xe30   :  { %720 = vrot.lane.b32.xlu1 %v718_v10, %s1433_s2  ;;  %v1051_v10 = vld [vmem:[%s1737_s5 + $0x8] sm:$0xff] }
 0xea2   :  { %v721_v11 = vpop.permute.xlu1 %720 }
 0xea3   :  { %v723_v2 = vmul.f32 %v1387_v59, %v721_v11  ;;  %v1050_v11 = vld [vmem:[%s1737_s5] sm:$0xff] }
 0xea5   :  { %725 = vrot.lane.b32.xlu0 %v723_v2, %s1434_s23 }
 0xf17   :  { %v726_v13 = vpop.permute.xlu0 %725 }
 0xf18   :  { %v728_v14 = vadd.f32 %v1389_v8, %v726_v13 }
 0xf1a   :  { %732 = vrot.lane.b32.xlu1 %v728_v14, %s1432_s3 }
 0xf8c   :  { %v733_v15 = vpop.permute.xlu1 %732 }
 0xf8d   :  { %1319 = vmatmul.mubr.msk.f32.vlgmr.msra.gmra.mxu1 %vm46_vm0, %v733_v15 }
 0xf8e   :  { %1333 = vmatpush3.msra.mxu1 %v1482_v1  ;;  %1340 = vmatprep.mubr.msk.f32.mxu1 %vm1431_vm1, %v1430_v3  ;;  %v163_v1 = vadd.f32 %v1620_v0, %v1558_v17  ;;  %v1053_v17 = vld [vmem:[%s1737_s5 + $0x18] sm:$0xff]  ;;  %s1435_s5 = smov [#allocation3]  }
 0xf8f   :  { %1334 = vmatprep.subr.mxu1 %v1430_v3  ;;  %s1143_s21 = sshll.u32 %s1435_s5, 4  ;;  %s1144_s21 = int_to_ptr.vmem [resolvable:$true] %s1143_s21 }
 0xf90   :  { %1335 = vmatpush3.msra.mxu1 %v1491_v4  ;;  %s1408_s4 = scalar_lea.vmem %s1144_s21, 128  ;;  %p1413_p1 = scmp.lt.s32.totalorder %s1144_s21, %s1144_s21 }
 0xf91   :  { %1336 = vmatprep.subr.mxu1 %v1430_v3  ;;  %p1409_p0 = scmp.ne.s32.totalorder %s1144_s21, %s1408_s4  ;;  %p1414_p2 = scmp.lt.s32.totalorder %s1408_s4, %s1408_s4 }
 0xf92   :  { %1337 = vmatpush3.msra.mxu1 %v1501_v6 }
 0xf93   :  { %1338 = vmatprep.subr.mxu1 %v1430_v3  ;;  %p1415_p3 = por %p1414_p2, %p1413_p1 }
 0xf94   :  { %1339 = vmatpush3.msra.mxu1 %v1515_v9 }
 0xf95   :  { %p1416_p4 = pnand %p1415_p3, %p1409_p0 }
0x104d   :  { %v802_v16 = vpop.f32.mrf.mxu1 }
0x104e   :  { %v813_v18 = vadd.f32 %v802_v16, %v1551_v12  ;;  %v806_v20 = vadd.f32 %v802_v16, %v163_v1 }
0x104f   :  { %v1320_v19 = vpop.f32.mrf.mxu1 }
0x1050   :  { %815 = vrot.lane.b32.xlu0 %v813_v18, %s1432_s3  ;;  %v1171_v21 = vmul.f32 -1.442695, %v806_v20  ;;  %v1176_v18 = vld [vmem:[%s1738_s6] ss:$0 sm:$0xff] }
0x1052   :  { %1390 = vpow2.f32 %v1171_v21 }
0x105f   :  { %v1391_v4 = vpop.eup %1390 }
0x1060   :  { %v810_v22 = vadd.f32 1.0, %v1391_v4 }
0x1062   :  { %1392 = vrcp.f32 %v810_v22 }
0x106f   :  { %v1393_v6 = vpop.eup %1392 }
0x10c2   :  { %v816_v23 = vpop.permute.xlu0 %815 }
0x10c3   :  { %v818_v24 = vmul.f32 %v1393_v6, %v816_v23 }
0x10c5   :  { %820 = vrot.lane.b32.xlu1 %v818_v24, %s1432_s3 }
0x1137   :  { %v821_v9 = vpop.permute.xlu1 %820 }
0x1138   :  { %v823_v25 = vadd.f32 %v821_v9, %v163_v1 }
0x113a   :  { %1394 = vtanh.f32 %v823_v25 }
0x1147   :  { %v1395_v26 = vpop.eup %1394 }
0x1148   :  { %v825_v27 = vsub.f32 %v728_v14, %v1395_v26 }
0x114a   :  { %827 = vrot.lane.b32.xlu0 %v825_v27, %s1433_s2 }
0x11bc   :  { %v828_v28 = vpop.permute.xlu0 %827 }
0x11bd   :  { %v830_v0 = vmul.f32 %v1393_v6, %v828_v28 }
0x11bf   :  { %832 = vrot.lane.b32.xlu1 %v830_v0, %s1434_s23 }
0x1231   :  { %v833_v29 = vpop.permute.xlu1 %832 }
0x1232   :  { %v835_v30 = vadd.f32 %v1395_v26, %v833_v29 }
0x1234   :  { %839 = vrot.lane.b32.xlu0 %v835_v30, %s1432_s3 }
0x12a6   :  { %v840_v31 = vpop.permute.xlu0 %839 }
0x12a7   :  { %1330 = vmatmul.mubr.msk.f32.vlgmr.msra.gmra.mxu0 %vm46_vm0, %v840_v31 }
0x12a8   :  { %1351 = vmatprep.mubr.msk.f32.mxu0 %vm1431_vm1, %v1430_v3  ;;  %1344 = vmatpush3.msra.mxu0 %v1053_v17 }
0x12a9   :  { %1345 = vmatprep.subr.mxu0 %v1430_v3 }
0x12aa   :  { %1346 = vmatpush3.msra.mxu0 %v1052_v5 }
0x12ab   :  { %1347 = vmatprep.subr.mxu0 %v1430_v3 }
0x12ac   :  { %1348 = vmatpush3.msra.mxu0 %v1051_v10 }
0x12ad   :  { %1349 = vmatprep.subr.mxu0 %v1430_v3 }
0x12ae   :  { %1350 = vmatpush3.msra.mxu0 %v1050_v11 }
0x1367   :  { %v909_v32 = vpop.f32.mrf.mxu0 }
0x1368   :  { %v920_v33 = vadd.f32 %v909_v32, %v1551_v12  ;;  %v913_v36 = vadd.f32 %v909_v32, %v168_v35 }
0x1369   :  { %v1331_v34 = vpop.f32.mrf.mxu0 }
0x136a   :  { %922 = vrot.lane.b32.xlu1 %v920_v33, %s1432_s3  ;;  %v1173_v37 = vmul.f32 -1.442695, %v913_v36 }
0x136c   :  { %1396 = vpow2.f32 %v1173_v37 }
0x1379   :  { %v1397_v38 = vpop.eup %1396 }
0x137a   :  { %v917_v39 = vadd.f32 1.0, %v1397_v38 }
0x137c   :  { %1398 = vrcp.f32 %v917_v39 }
0x1389   :  { %v1399_v40 = vpop.eup %1398 }
0x13dc   :  { %v923_v41 = vpop.permute.xlu1 %922 }
0x13dd   :  { %v925_v42 = vmul.f32 %v1399_v40, %v923_v41 }
0x13df   :  { %927 = vrot.lane.b32.xlu0 %v925_v42, %s1432_s3 }
0x1451   :  { %v928_v43 = vpop.permute.xlu0 %927 }
0x1452   :  { %v930_v44 = vadd.f32 %v928_v43, %v168_v35 }
0x1454   :  { %1400 = vtanh.f32 %v930_v44 }
0x1461   :  { %v1401_v45 = vpop.eup %1400 }
0x1462   :  { %v932_v46 = vsub.f32 %v835_v30, %v1401_v45 }
0x1464   :  { %934 = vrot.lane.b32.xlu1 %v932_v46, %s1433_s2 }
0x14d6   :  { %v935_v47 = vpop.permute.xlu1 %934 }
0x14d7   :  { %v937_v7 = vmul.f32 %v1399_v40, %v935_v47 }
0x14d9   :  { %939 = vrot.lane.b32.xlu0 %v937_v7, %s1434_s23 }
0x154b   :  { %v940_v48 = vpop.permute.xlu0 %939 }
0x154c   :  { %v942_v49 = vadd.f32 %v1401_v45, %v940_v48 }
0x154e   :  { %946 = vrot.lane.b32.xlu1 %v942_v49, %s1432_s3 }
0x15c0   :  { %v947_v50 = vpop.permute.xlu1 %946 }
0x15c1   :  { %1341 = vmatmul.mubr.msk.f32.vlgmr.msra.gmra.mxu1 %vm46_vm0, %v947_v50 }
0x1681   :  { %v1016_v51 = vpop.f32.mrf.mxu1 }
0x1682   :  { %v1027_v52 = vadd.f32 %v1016_v51, %v1551_v12  ;;  %v1020_v55 = vadd.f32 %v1016_v51, %v173_v54 }
0x1683   :  { %v1342_v53 = vpop.f32.mrf.mxu1 }
0x1684   :  { %1029 = vrot.lane.b32.xlu0 %v1027_v52, %s1432_s3  ;;  %v1175_v56 = vmul.f32 -1.442695, %v1020_v55 }
0x1686   :  { %1402 = vpow2.f32 %v1175_v56 }
0x1693   :  { %v1403_v57 = vpop.eup %1402 }
0x1694   :  { %v1024_v58 = vadd.f32 1.0, %v1403_v57 }
0x1696   :  { %1404 = vrcp.f32 %v1024_v58 }
0x16a3   :  { %v1405_v59 = vpop.eup %1404 }
0x16f6   :  { %v1030_v60 = vpop.permute.xlu0 %1029 }
0x16f7   :  { %v1032_v61 = vmul.f32 %v1405_v59, %v1030_v60 }
0x16f9   :  { %1034 = vrot.lane.b32.xlu1 %v1032_v61, %s1432_s3 }
0x176b   :  { %v1035_v62 = vpop.permute.xlu1 %1034 }
0x176c   :  { %v1037_v63 = vadd.f32 %v1035_v62, %v173_v54 }
0x176e   :  { %1406 = vtanh.f32 %v1037_v63 }
0x177b   :  { %v1407_v12 = vpop.eup %1406 }
0x177c   :  { %v1039_v8 = vsub.f32 %v942_v49, %v1407_v12 }
0x177e   :  { %1041 = vrot.lane.b32.xlu0 %v1039_v8, %s1433_s2 }
0x17f0   :  { %v1042_v2 = vpop.permute.xlu0 %1041 }
0x17f1   :  { %v1044_v13 = vmul.f32 %v1405_v59, %v1042_v2 }
0x17f3   :  { %1046 = vrot.lane.b32.xlu1 %v1044_v13, %s1434_s23 }
0x1865   :  { %v1047_v14 = vpop.permute.xlu1 %1046 }
0x1866   :  { %v1049_v15 = vadd.f32 %v1407_v12, %v1047_v14 }
0x1868   :  { %1062 = vrot.lane.b32.xlu0 %v1049_v15, %s1432_s3 }
0x18da   :  { %v1063_v16 = vpop.permute.xlu0 %1062 }
0x18db   :  { %1352 = vmatmul.mubr.msk.f32.vlgmr.msra.gmra.mxu0 %vm46_vm0, %v1063_v16 }
0x199b   :  { %v1132_v19 = vpop.f32.mrf.mxu0 }
0x199c   :  { %v1133_v3 = vadd.f32 %v1176_v18, %v1132_v19 }
0x199d   :  { %v1353_v1 = vpop.f32.mrf.mxu0 }
0x199e   :  { %1136 = vst [vmem:[#allocation3] sm:$0xff] %v1133_v3 }
0x199f   :  { %1419 = shalt.err (!%p1416_p4)
}
0x19a0   :  { %1146 = dma.vmem_to_hbm [thread:$0]  %s1144_s21, 128, %s1739_s7, [#allocation4]  }
0x19a1   :  { %1428 = dma.done.wait [#allocation4], 128  }
0x19a2   :  { %1429 = vsyncadd [#allocation4], 4294967168 }
0x19a3   :  { %1150 = vsyncpa [#allocation4], 1 }

</bundles_post_ra>
